<compile_context>
chip_gen: v6e
topology: v6e:2x2x1
jax: 0.10.0
libtpu: 0.0.40
codegen_flags: <defaults>
</compile_context>

<pallas_src>
import jax
import jax.numpy as jnp
from jax import lax
from jax.experimental import pallas as pl
from jax.experimental.pallas import tpu as pltpu


def _round_up(x, m):
    return ((x + m - 1) // m) * m


def _dfl_rowloss_kernel(pred_t_ref, label_ref, loss_ref):
    # pred_t_ref: (C, TN)  logits before softmax (bins on sublanes, rows on lanes)
    # label_ref:  (1, TN)  float target distances
    # loss_ref:   (1, TN)  per-row DFL loss (f32)
    pred = pred_t_ref[...].astype(jnp.float32)              # (C, TN)
    label = label_ref[...].astype(jnp.float32)              # (1, TN)
    c, tn = pred.shape

    # log-sum-exp pieces over the bin (sublane) axis
    m = jnp.max(pred, axis=0, keepdims=True)                 # (1, TN)
    lse = jnp.log(jnp.sum(jnp.exp(pred - m), axis=0, keepdims=True))

    # integer bin indices; labels are >= 0 so floor == trunc (torch .long())
    dis_left = jnp.floor(label).astype(jnp.int32)            # (1, TN)
    w_right = label - dis_left.astype(jnp.float32)           # (1, TN)
    w_left = 1.0 - w_right

    # combined weighted one-hot over bins, int32 compare against sublane iota
    rows = lax.broadcasted_iota(jnp.int32, (c, tn), 0)        # (C, TN)
    w = jnp.where(rows == dis_left, w_left,
                  jnp.where(rows == dis_left + 1, w_right, 0.0))

    # loss = (w_l + w_r) * (m + lse) - (w_l*pred_l + w_r*pred_r); w_l + w_r == 1
    gathered = jnp.sum(pred * w, axis=0, keepdims=True)       # (1, TN)
    loss_ref[...] = m + lse - gathered


def distribution_focal_loss_pallas(pred, target, weight=None, reduction='mean',
                                   avg_factor=None, loss_weight=1.0,
                                   tile_n=32768,
                                   vmem_budget_bytes=12 * 1024 * 1024):
    """Pallas implementation of DistributionFocalLoss.forward.

    pred:   (N, C) logits (f32 or bf16), C = n+1 bins.
    target: (N,)   float target distances in [0, n).
    """
    pred = jnp.asarray(pred)
    target = jnp.asarray(target)
    N, C = pred.shape

    # --- tile / padding selection -----------------------------------------
    n_pad128 = _round_up(N, 128)

    # clamp the row tile so (pred + label + loss) double-buffered blocks stay
    # well under the scoped-VMEM default on every chip (16 MiB on v5e)
    bytes_per_row = 2 * (C * pred.dtype.itemsize + 4 + 4)
    max_tile = max(128, ((vmem_budget_bytes // bytes_per_row) // 128) * 128)

    tile_n = max(128, (int(tile_n) // 128) * 128)
    tile_n = min(tile_n, max_tile, n_pad128)
    # prefer >= 2 grid steps when there is enough work so the "parallel" axis
    # can shard across the 2 TensorCores on v7x (and pipeline DMA/compute)
    half = _round_up(pl.cdiv(N, 2), 128)
    if n_pad128 >= 2 * 128 and tile_n > half:
        tile_n = half
    n_pad = _round_up(N, tile_n)
    grid_n = n_pad // tile_n

    # --- layout plumbing: transposed, lane-dense, padded -------------------
    # TODO(synk): the (N,C)->(C,N) transpose is one extra fused XLA pass over
    # pred; folding it into the kernel (in-VMEM vxpose) is a possible further
    # optimization but is kept out to stay on the proven lowering path.
    pred_t = jnp.transpose(pred)                              # (C, N), keeps dtype (bf16 ok)
    label = target.astype(jnp.float32)
    if n_pad != N:
        pred_t = jnp.pad(pred_t, ((0, 0), (0, n_pad - N)))     # padded rows sliced off below
        label = jnp.pad(label, (0, n_pad - N))
    label2d = label.reshape(1, n_pad)

    cost = pl.CostEstimate(
        flops=int(8 * N * C),
        transcendentals=int(N * (C + 1)),
        bytes_accessed=int(N * C * pred.dtype.itemsize + 4 * N + 4 * N),
    )

    loss2d = pl.pallas_call(
        _dfl_rowloss_kernel,
        out_shape=jax.ShapeDtypeStruct((1, n_pad), jnp.float32),
        grid=(grid_n,),
        in_specs=[
            pl.BlockSpec((C, tile_n), lambda i: (0, i)),      # bins = full dim, rows tiled
            pl.BlockSpec((1, tile_n), lambda i: (0, i)),
        ],
        out_specs=pl.BlockSpec((1, tile_n), lambda i: (0, i)),
        compiler_params=pltpu.CompilerParams(
            dimension_semantics=("parallel",)),
        cost_estimate=cost,
    )(pred_t, label2d)

    loss = loss2d[0, :N]                                       # drop padded tail

    # --- weight_reduce_loss semantics (glue in plain JAX) -------------------
    if weight is not None:
        loss = loss * weight
    if avg_factor is None:
        if reduction == 'mean':
            loss = jnp.mean(loss)
        elif reduction == 'sum':
            loss = jnp.sum(loss)
        elif reduction != 'none':
            raise ValueError(f'invalid reduction: {reduction}')
    elif reduction == 'mean':
        loss = jnp.sum(loss) / avg_factor
    elif reduction != 'none':
        raise ValueError('avg_factor can not be used with reduction="sum"')

    return loss_weight * loss


def _reference_dfl(pred, target, reduction='mean'):
    """Pure-JAX reference for verification (mirrors the PyTorch module)."""
    logp = jax.nn.log_softmax(pred.astype(jnp.float32), axis=-1)
    dis_left = jnp.floor(target).astype(jnp.int32)
    dis_right = dis_left + 1
    wl = dis_right.astype(jnp.float32) - target
    wr = target - dis_left.astype(jnp.float32)
    ce_l = -jnp.take_along_axis(logp, dis_left[:, None], axis=-1)[:, 0]
    ce_r = -jnp.take_along_axis(logp, dis_right[:, None], axis=-1)[:, 0]
    loss = ce_l * wl + ce_r * wr
    if reduction == 'mean':
        return jnp.mean(loss)
    if reduction == 'sum':
        return jnp.sum(loss)
    return loss


if __name__ == "__main__":
    # DistributionFocalLoss(reduction='mean', loss_weight=1.0) — no learnable params.
    C = 17   # n+1 bins, n = 16 (standard GFL setting)

    key = jax.random.PRNGKey(0)
    k_pred, k_tgt, k_w, k_pred2, k_tgt2 = jax.random.split(key, 5)

    # --- case 1: small N, single tile, padded (N not a multiple of 128) ----
    N = 64
    pred = jax.random.normal(k_pred, (N, C), dtype=jnp.float32)
    target = jax.random.uniform(k_tgt, (N,), minval=0.0,
                                maxval=float(C - 1) - 1e-3)

    out_mean = distribution_focal_loss_pallas(pred, target, reduction='mean')
    ref_mean = _reference_dfl(pred, target, 'mean')
    assert jnp.allclose(out_mean, ref_mean, rtol=1e-5, atol=1e-5), (out_mean, ref_mean)

    out_none = distribution_focal_loss_pallas(pred, target, reduction='none')
    ref_none = _reference_dfl(pred, target, 'none')
    assert jnp.allclose(out_none, ref_none, rtol=1e-5, atol=1e-5)

    w = jax.random.uniform(k_w, (N,), minval=0.0, maxval=2.0)
    out_w = distribution_focal_loss_pallas(pred, target, weight=w,
                                           reduction='mean', avg_factor=37.0,
                                           loss_weight=0.25)
    ref_w = 0.25 * jnp.sum(ref_none * w) / 37.0
    assert jnp.allclose(out_w, ref_w, rtol=1e-5, atol=1e-5), (out_w, ref_w)

    # bf16 pred accepted directly (halves input HBM bytes; math stays f32)
    out_bf = distribution_focal_loss_pallas(pred.astype(jnp.bfloat16), target,
                                            reduction='sum')
    ref_bf = _reference_dfl(pred.astype(jnp.bfloat16), target, 'sum')
    assert jnp.allclose(out_bf, ref_bf, rtol=1e-4, atol=1e-4), (out_bf, ref_bf)

    # --- case 2: multi-tile grid + padded last tile -------------------------
    N2 = 333
    pred2 = jax.random.normal(k_pred2, (N2, C), dtype=jnp.float32)
    target2 = jax.random.uniform(k_tgt2, (N2,), minval=0.0,
                                 maxval=float(C - 1) - 1e-3)
    out2 = distribution_focal_loss_pallas(pred2, target2, reduction='mean')
    ref2 = _reference_dfl(pred2, target2, 'mean')
    out2 = jax.block_until_ready(out2)
    assert jnp.allclose(out2, ref2, rtol=1e-5, atol=1e-5), (out2, ref2)

    print("KERNEL_OK")
</pallas_src>

<mosaic_0001>
module attributes {stable_mosaic.version = 11 : i64} {
  func.func @_dfl_rowloss_kernel(%arg0: i32, %arg1: memref<17x128xf32, #tpu.memory_space<vmem>>, %arg2: memref<1x128xf32, #tpu.memory_space<vmem>>, %arg3: memref<1x128xf32, #tpu.memory_space<vmem>>) attributes {dimension_semantics = [#tpu.dimension_semantics<parallel>], iteration_bounds = array<i64: 1>, scalar_prefetch = 0 : i64, scratch_operands = 0 : i64, tpu.core_type = #tpu.core_type<tc>, window_params = [{transform_indices = @transform_0, window_bounds = array<i64: 17, 128>}, {transform_indices = @transform_1, window_bounds = array<i64: 1, 128>}, {transform_indices = @transform_2, window_bounds = array<i64: 1, 128>}]} {
    %c0 = arith.constant 0 : index
    %c0_0 = arith.constant 0 : index
    %0 = vector.load %arg1[%c0, %c0_0] : memref<17x128xf32, #tpu.memory_space<vmem>>, vector<17x128xf32>
    %c0_1 = arith.constant 0 : index
    %c0_2 = arith.constant 0 : index
    %1 = vector.load %arg2[%c0_1, %c0_2] : memref<1x128xf32, #tpu.memory_space<vmem>>, vector<1x128xf32>
    %cst = arith.constant dense<0xFF800000> : vector<128xf32>
    %2 = vector.multi_reduction <maximumf>, %0, %cst [0] : vector<17x128xf32> to vector<128xf32>
    %3 = vector.shape_cast %2 : vector<128xf32> to vector<1x128xf32>
    %4 = vector.broadcast %3 : vector<1x128xf32> to vector<17x128xf32>
    %5 = arith.subf %0, %4 : vector<17x128xf32>
    %6 = math.exp %5 : vector<17x128xf32>
    %cst_3 = arith.constant dense<0.000000e+00> : vector<128xf32>
    %7 = vector.multi_reduction <add>, %6, %cst_3 [0] : vector<17x128xf32> to vector<128xf32>
    %8 = vector.shape_cast %7 : vector<128xf32> to vector<1x128xf32>
    %9 = math.log %8 : vector<1x128xf32>
    %10 = math.floor %1 : vector<1x128xf32>
    %11 = arith.fptosi %10 : vector<1x128xf32> to vector<1x128xi32>
    %12 = arith.sitofp %11 : vector<1x128xi32> to vector<1x128xf32>
    %13 = arith.subf %1, %12 : vector<1x128xf32>
    %cst_4 = arith.constant 1.000000e+00 : f32
    %14 = vector.broadcast %cst_4 : f32 to vector<1x128xf32>
    %15 = arith.subf %14, %13 : vector<1x128xf32>
    %16 = tpu.iota {dimensions = array<i32: 0>} : vector<17x128xi32>
    %17 = vector.broadcast %11 : vector<1x128xi32> to vector<17x128xi32>
    %18 = arith.cmpi eq, %16, %17 : vector<17x128xi32>
    %c1_i32 = arith.constant 1 : i32
    %19 = vector.broadcast %c1_i32 : i32 to vector<1x128xi32>
    %20 = arith.addi %11, %19 : vector<1x128xi32>
    %21 = vector.broadcast %20 : vector<1x128xi32> to vector<17x128xi32>
    %22 = arith.cmpi eq, %16, %21 : vector<17x128xi32>
    %cst_5 = arith.constant 0.000000e+00 : f32
    %23 = vector.shape_cast %13 : vector<1x128xf32> to vector<1x128xf32>
    %24 = vector.broadcast %23 : vector<1x128xf32> to vector<17x128xf32>
    %25 = vector.broadcast %cst_5 : f32 to vector<17x128xf32>
    %26 = arith.select %22, %24, %25 : vector<17x128xi1>, vector<17x128xf32>
    %27 = vector.shape_cast %15 : vector<1x128xf32> to vector<1x128xf32>
    %28 = vector.broadcast %27 : vector<1x128xf32> to vector<17x128xf32>
    %29 = arith.select %18, %28, %26 : vector<17x128xi1>, vector<17x128xf32>
    %30 = arith.mulf %0, %29 : vector<17x128xf32>
    %cst_6 = arith.constant dense<0.000000e+00> : vector<128xf32>
    %31 = vector.multi_reduction <add>, %30, %cst_6 [0] : vector<17x128xf32> to vector<128xf32>
    %32 = vector.shape_cast %31 : vector<128xf32> to vector<1x128xf32>
    %33 = arith.addf %3, %9 : vector<1x128xf32>
    %34 = arith.subf %33, %32 : vector<1x128xf32>
    %c0_7 = arith.constant 0 : index
    %c0_8 = arith.constant 0 : index
    %35 = vector.load %arg3[%c0_7, %c0_8] : memref<1x128xf32, #tpu.memory_space<vmem>>, vector<1x128xf32>
    tpu.vector_store %arg3[%c0_7, %c0_8], %34 {strides = array<i32>} : memref<1x128xf32, #tpu.memory_space<vmem>>, vector<1x128xf32>,
    return
  }
  func.func @transform_0(%arg0: i32) -> (i32, i32) {
    %c0_i32 = arith.constant 0 : i32
    %c0_i32_0 = arith.constant 0 : i32
    return %c0_i32, %arg0 : i32, i32
  }
  func.func @transform_1(%arg0: i32) -> (i32, i32) {
    %c0_i32 = arith.constant 0 : i32
    %c0_i32_0 = arith.constant 0 : i32
    return %c0_i32, %arg0 : i32, i32
  }
  func.func @transform_2(%arg0: i32) -> (i32, i32) {
    %c0_i32 = arith.constant 0 : i32
    %c0_i32_0 = arith.constant 0 : i32
    return %c0_i32, %arg0 : i32, i32
  }
}

</mosaic_0001>

<bundles_post_ra>
// kernel: tpu_custom_call.1
= control target key start
LH: loop header
LB: loop body
LE: loop exit
PB: predicated region body
PF: predicated region fallthrough
CT: control target
= control target key end

     0   :  { %7 = vsyncpa [#allocation3], 0  ;;  %s221_s0 = inlined_call_operand.hbm [shape: f32[17,128], index: 0, kind: input, shape index: {}]   ;;  %s222_s1 = inlined_call_operand.vmem [shape: f32[1,128], index: 1, kind: input, shape index: {}]   ;;  %s223_s2 = inlined_call_operand.hbm [shape: f32[1,128], index: 2, kind: output, shape index: {}]  }
   0x1   :  { %8 = vsyncpa [#allocation4], 0  ;;  %s190_s9 = smov [#allocation2]  }
   0x2   :  { %s14_s10 = sshll.u32 %s190_s9, 4  ;;  %s15_s10 = int_to_ptr.vmem [resolvable:$true] %s14_s10 }
   0x3   :  { %s154_s11 = scalar_lea.vmem %s15_s10, 384  ;;  %p159_p1 = scmp.lt.s32.totalorder %s15_s10, %s15_s10 }
   0x4   :  { %p155_p0 = scmp.ne.s32.totalorder %s15_s10, %s154_s11  ;;  %p160_p2 = scmp.lt.s32.totalorder %s154_s11, %s154_s11 }
   0x6   :  { %p161_p3 = por %p160_p2, %p159_p1 }
   0x8   :  { %p162_p4 = pnand %p161_p3, %p155_p0 }
   0xa   :  { %165 = shalt.err (!%p162_p4)
}
   0xb   :  { %s191_s12 = smov 128   ;;  %s192_s13 = smov 8  }
   0xc   :  { %20 = dma.hbm_to_vmem [thread:$0]  %s221_s0, 384, %s15_s10, [#allocation3], %s191_s12, %s191_s12, %s192_s13  }
   0xd   :  { %186 = dma.done.wait [#allocation3], 384  }
   0xe   :  { %187 = vsyncadd [#allocation3], 4294966912  ;;  %vm30_vm0 = vcmask 1040384   ;;  %v26_v0 = vld [vmem:[#allocation2] sm:$0xff]  ;;  %v27_v1 = vld [vmem:[#allocation2 + $0x8] sm:$0xff]  ;;  %v65_v11 = vlaneseq  ;;  %s193_s0 = smov [#allocation5]  }
   0xf   :  { %v28_v2 = vld [vmem:[#allocation2 + $0x10] sm:$0x1]  ;;  %v29_v3 = vld [vmem:[%s222_s1] sm:$0x1]  ;;  %v32_v5 = vmax.f32 %v26_v0, %v27_v1  ;;  %s123_s1 = sshll.u32 %s193_s0, 4  ;;  %s124_s1 = int_to_ptr.vmem [resolvable:$true] %s123_s1 }
  0x10   :  { %v31_v4 = vsel %vm30_vm0, %v28_v2, -inf  ;;  %v60_v7 = vfloor.f32 %v29_v3  ;;  %v66_v15 = vshrl.u32 %v65_v11, 7  ;;  %s166_s18 = scalar_lea.vmem %s124_s1, 16  ;;  %s170_s19 = scalar_lea.vmem %s124_s1, 32 }
  0x11   :  { %v33_v6 = vmax.f32 %v32_v5, %v31_v4  ;;  %p167_p5 = scmp.ne.s32.totalorder %s124_s1, %s166_s18  ;;  %p171_p6 = scmp.lt.s32.totalorder %s124_s1, %s124_s1 }
  0x12   :  { %v132_v10 = vtrunc.f32 %v60_v7  ;;  %v71_v19 = vsub.s32 0, %v66_v15  ;;  %v67_v28 = vadd.s32 8, %v66_v15  ;;  %v68_v30 = vadd.s32 16, %v66_v15  ;;  %p172_p7 = scmp.lt.s32.totalorder %s170_s19, %s166_s18 }
  0x13   :  { %v34_v8 = vrot.slane %v33_v6, 4 }
  0x14   :  { %v133_v14 = vcvt.f32.s32 %v132_v10  ;;  %p173_p8 = por %p172_p7, %p171_p6 }
  0x15   :  { %v35_v9 = vmax.f32 %v33_v6, %v34_v8 }
  0x16   :  { %v62_v18 = vcvt.s32.f32 %v133_v14  ;;  %v76_v23 = vadd.s32 1, %v133_v14  ;;  %v72_v32 = vrot.slane %v133_v14, %v71_v19  ;;  %p174_p9 = pnand %p173_p8, %p167_p5 }
  0x17   :  { %v36_v12 = vrot.slane %v35_v9, 2 }
  0x18   :  { %v63_v27 = vsub.f32 %v29_v3, %v62_v18  ;;  %v80_v29 = vrot.slane %v76_v23, %v71_v19  ;;  %vm73_vm4 = vcmp.eq.s32.totalorder %v66_v15, %v72_v32  ;;  %vm74_vm5 = vcmp.eq.s32.totalorder %v67_v28, %v72_v32 }
  0x19   :  { %v37_v13 = vmax.f32 %v35_v9, %v36_v12  ;;  %vm75_vm6 = vcmp.eq.s32.totalorder %v68_v30, %v72_v32 }
  0x1a   :  { %v64_v31 = vsub.f32 1.0, %v63_v27  ;;  %v88_v33 = vrot.slane %v63_v27, %v71_v19  ;;  %vm81_vm1 = vcmp.eq.s32.totalorder %v66_v15, %v80_v29  ;;  %vm82_vm2 = vcmp.eq.s32.totalorder %v67_v28, %v80_v29 }
  0x1b   :  { %v38_v16 = vrot.slane %v37_v13, 1  ;;  %vm83_vm3 = vcmp.eq.s32.totalorder %v68_v30, %v80_v29 }
  0x1c   :  { %v97_v34 = vrot.slane %v64_v31, %v71_v19  ;;  %v90_v35 = vsel %vm81_vm1, %v88_v33, 0.0  ;;  %v91_v36 = vsel %vm82_vm2, %v88_v33, 0.0  ;;  %v92_v37 = vsel %vm83_vm3, %v88_v33, 0.0 }
  0x1d   :  { %v39_v17 = vmax.f32 %v37_v13, %v38_v16 }
  0x1e   :  { %v99_v38 = vsel %vm73_vm4, %v97_v34, %v90_v35  ;;  %v100_v39 = vsel %vm74_vm5, %v97_v34, %v91_v36  ;;  %v101_v40 = vsel %vm75_vm6, %v97_v34, %v92_v37 }
  0x1f   :  { %v40_v20 = vsub.f32 %v26_v0, %v39_v17  ;;  %v41_v21 = vsub.f32 %v27_v1, %v39_v17  ;;  %v42_v22 = vsub.f32 %v28_v2, %v39_v17  ;;  %v102_v42 = vmul.f32 %v99_v38, %v26_v0 }
  0x20   :  { %v103_v43 = vmul.f32 %v100_v39, %v27_v1  ;;  %v104_v45 = vmul.f32 %v101_v40, %v28_v2 }
  0x21   :  { %v43_v24 = vmul.f32 1.442695, %v40_v20  ;;  %v45_v25 = vmul.f32 1.442695, %v41_v21  ;;  %v47_v26 = vmul.f32 1.442695, %v42_v22 }
  0x22   :  { %v105_v50 = vadd.f32 %v103_v43, %v102_v42  ;;  %v106_v51 = vsel %vm30_vm0, %v104_v45, 0.0 }
  0x23   :  { %138 = vpow2.f32 %v43_v24 }
  0x24   :  { %140 = vpow2.f32 %v45_v25  ;;  %v107_v54 = vadd.f32 %v106_v51, %v105_v50 }
  0x25   :  { %142 = vpow2.f32 %v47_v26 }
  0x26   :  { %v108_v57 = vrot.slane %v107_v54, 4 }
  0x28   :  { %v109_v60 = vadd.f32 %v108_v57, %v107_v54 }
  0x2a   :  { %v110_v61 = vrot.slane %v109_v60, 2 }
  0x2c   :  { %v111_v62 = vadd.f32 %v110_v61, %v109_v60 }
  0x2e   :  { %v112_v63 = vrot.slane %v111_v62, 1 }
  0x30   :  { %v139_v41 = vpop.eup %138  ;;  %v113_v2 = vadd.f32 %v112_v63, %v111_v62 }
  0x31   :  { %v141_v44 = vpop.eup %140 }
  0x32   :  { %v143_v46 = vpop.eup %142  ;;  %v49_v47 = vadd.f32 %v141_v44, %v139_v41 }
  0x33   :  { %v50_v48 = vsel %vm30_vm0, %v143_v46, 0.0 }
  0x34   :  { %v51_v49 = vadd.f32 %v50_v48, %v49_v47 }
  0x36   :  { %v52_v52 = vrot.slane %v51_v49, 4 }
  0x38   :  { %v53_v53 = vadd.f32 %v52_v52, %v51_v49 }
  0x3a   :  { %v54_v55 = vrot.slane %v53_v53, 2 }
  0x3c   :  { %v55_v56 = vadd.f32 %v54_v55, %v53_v53 }
  0x3e   :  { %v56_v58 = vrot.slane %v55_v56, 1 }
  0x40   :  { %v57_v59 = vadd.f32 %v56_v58, %v55_v56 }
  0x42   :  { %144 = vlog2.f32 %v57_v59 }
  0x4f   :  { %v145_v0 = vpop.eup %144 }
  0x50   :  { %v59_v1 = vmul.f32 0.6931472, %v145_v0 }
  0x52   :  { %v114_v3 = vadd.f32 %v59_v1, %v39_v17 }
  0x54   :  { %v115_v4 = vsub.f32 %v114_v3, %v113_v2 }
  0x56   :  { %116 = vst [vmem:[#allocation5] sm:$0x1] %v115_v4 }
  0x57   :  { %177 = shalt.err (!%p174_p9)
}
  0x58   :  { %126 = dma.vmem_to_hbm [thread:$0]  %s124_s1, 16, %s223_s2, [#allocation4]  }
  0x59   :  { %188 = dma.done.wait [#allocation4], 16  }
  0x5a   :  { %189 = vsyncadd [#allocation4], 4294967280 }
  0x5b   :  { %130 = vsyncpa [#allocation3], 1 }
  0x5c   :  { %131 = vsyncpa [#allocation4], 1 }

</bundles_post_ra>
